<compile_context>
chip_gen: v7x
topology: tpu7x:2x2x1
jax: 0.10.0
libtpu: 0.0.40
codegen_flags: <defaults>
</compile_context>

<pallas_src>
import functools

import jax
import jax.numpy as jnp
from jax.experimental import pallas as pl
from jax.experimental.pallas import tpu as pltpu


def _pc_to_bev_kernel(x_ref, y_ref, out_ref, *, x_scale, y_scale):
    # x_ref, y_ref: (TH, W) VMEM tiles of channel 0 / channel 2.
    # out_ref     : (TH, 2*W) VMEM tile. Columns [:W] hold x_norm, [W:] hold
    #               y_norm, which is byte-identical to the (TH, 2, W)
    #               stack(dim=2) layout for these rows.
    x_norm = x_ref[...] * x_scale - 1.0
    y_norm = y_ref[...] * y_scale - 1.0
    out_ref[...] = jnp.concatenate([x_norm, y_norm], axis=-1)


def _choose_row_tile(H, W, itemsize, target_bytes=4 * 1024 * 1024):
    """Largest multiple-of-8 divisor of H keeping per-step VMEM use ~target."""
    # Per grid step: 2 input tiles (TH*W) + 1 output tile (TH*2W) = 4*TH*W elems
    # (x2 for double buffering, handled by keeping `target_bytes` modest).
    max_rows = target_bytes // max(1, 4 * W * itemsize)
    max_rows = min(H, max(8, (max_rows // 8) * 8))
    if H <= max_rows:
        return H
    th = max_rows
    while th >= 8:
        if H % th == 0:
            return th
        th -= 8
    return H  # fallback: whole-height block (always a legal block shape)


def pointcloud_to_bev(bev_pointcloud):
    assert bev_pointcloud.ndim == 4, (
        "The input batch of BEV images has {} dimensions which is != 4".format(
            bev_pointcloud.ndim))
    B, C, H, W = bev_pointcloud.shape
    assert C == 3
    assert H > 1 and W > 1, "H and W must be > 1 (division by H-1 / W-1)"

    itemsize = jnp.dtype(bev_pointcloud.dtype).itemsize
    TH = _choose_row_tile(H, W, itemsize)
    grid = (B, H // TH)

    kernel = functools.partial(
        _pc_to_bev_kernel,
        x_scale=2.0 / (W - 1),
        y_scale=2.0 / (H - 1),
    )

    stacked = pl.pallas_call(
        kernel,
        out_shape=jax.ShapeDtypeStruct((B, H, 2 * W), bev_pointcloud.dtype),
        grid=grid,
        in_specs=[
            # channel 0 (x) and channel 2 (y); channel 1 is never read.
            pl.BlockSpec((pl.Squeezed(), pl.Squeezed(), TH, W),
                         lambda b, h: (b, 0, h, 0)),
            pl.BlockSpec((pl.Squeezed(), pl.Squeezed(), TH, W),
                         lambda b, h: (b, 2, h, 0)),
        ],
        out_specs=pl.BlockSpec((pl.Squeezed(), TH, 2 * W),
                               lambda b, h: (b, h, 0)),
        compiler_params=pltpu.CompilerParams(
            dimension_semantics=("parallel", "parallel")),
    )(bev_pointcloud, bev_pointcloud)

    # (B, H, 2*W) has the same bytes as torch.stack([...], dim=2) -> (B, H, 2, W);
    # the reshape reproduces PyTorch's `.view(B, H, W, 2)` reinterpretation.
    return stacked.reshape(B, H, W, 2)


def _reference(bev_pointcloud):
    """Pure-JAX reference of the (intended) PyTorch forward."""
    B, _, H, W = bev_pointcloud.shape
    x_bev = bev_pointcloud[:, 0, :, :]
    y_bev = bev_pointcloud[:, 2, :, :]
    x_norm = (x_bev / (W - 1) - 0.5) * 2
    y_norm = (y_bev / (H - 1) - 0.5) * 2
    pix = jnp.stack([x_norm, y_norm], axis=2)        # (B, H, 2, W)
    return pix.reshape(B, H, W, 2)                   # same as torch .view


if __name__ == "__main__":
    key = jax.random.PRNGKey(0)
    B, C, H, W = 2, 3, 16, 16
    bev_pointcloud = jax.random.normal(key, (B, C, H, W), dtype=jnp.float32) * 10.0

    out = pointcloud_to_bev(bev_pointcloud)
    out = jax.block_until_ready(out)

    ref = _reference(bev_pointcloud)
    assert out.shape == (B, H, W, 2)
    assert out.dtype == jnp.float32
    assert jnp.allclose(out, ref, atol=1e-5, rtol=1e-6), \
        float(jnp.max(jnp.abs(out - ref)))

    print("KERNEL_OK")
</pallas_src>

<mosaic_0001>
module attributes {stable_mosaic.version = 11 : i64} {
  func.func @_pc_to_bev_kernel(%arg0: i32, %arg1: i32, %arg2: memref<1x1x16x16xf32, #tpu.memory_space<vmem>>, %arg3: memref<1x1x16x16xf32, #tpu.memory_space<vmem>>, %arg4: memref<1x16x32xf32, #tpu.memory_space<vmem>>) attributes {dimension_semantics = [#tpu.dimension_semantics<parallel>, #tpu.dimension_semantics<parallel>], iteration_bounds = array<i64: 2, 1>, scalar_prefetch = 0 : i64, scratch_operands = 0 : i64, tpu.core_type = #tpu.core_type<tc>, window_params = [{transform_indices = @transform_0, window_bounds = array<i64: 1, 1, 16, 16>}, {transform_indices = @transform_1, window_bounds = array<i64: 1, 1, 16, 16>}, {transform_indices = @transform_2, window_bounds = array<i64: 1, 16, 32>}]} {
    %c0 = arith.constant 0 : index
    %c0_0 = arith.constant 0 : index
    %c0_1 = arith.constant 0 : index
    %c0_2 = arith.constant 0 : index
    %0 = vector.load %arg2[%c0, %c0_0, %c0_1, %c0_2] : memref<1x1x16x16xf32, #tpu.memory_space<vmem>>, vector<1x1x16x16xf32>
    %1 = vector.shape_cast %0 : vector<1x1x16x16xf32> to vector<16x16xf32>
    %cst = arith.constant 0.13333334 : f32
    %2 = vector.broadcast %cst : f32 to vector<16x16xf32>
    %3 = arith.mulf %1, %2 : vector<16x16xf32>
    %cst_3 = arith.constant 1.000000e+00 : f32
    %4 = vector.broadcast %cst_3 : f32 to vector<16x16xf32>
    %5 = arith.subf %3, %4 : vector<16x16xf32>
    %c0_4 = arith.constant 0 : index
    %c0_5 = arith.constant 0 : index
    %c0_6 = arith.constant 0 : index
    %c0_7 = arith.constant 0 : index
    %6 = vector.load %arg3[%c0_4, %c0_5, %c0_6, %c0_7] : memref<1x1x16x16xf32, #tpu.memory_space<vmem>>, vector<1x1x16x16xf32>
    %7 = vector.shape_cast %6 : vector<1x1x16x16xf32> to vector<16x16xf32>
    %cst_8 = arith.constant 0.13333334 : f32
    %8 = vector.broadcast %cst_8 : f32 to vector<16x16xf32>
    %9 = arith.mulf %7, %8 : vector<16x16xf32>
    %cst_9 = arith.constant 1.000000e+00 : f32
    %10 = vector.broadcast %cst_9 : f32 to vector<16x16xf32>
    %11 = arith.subf %9, %10 : vector<16x16xf32>
    %12 = tpu.concatenate %5, %11 in 1 : vector<16x16xf32>, vector<16x16xf32> -> vector<16x32xf32>
    %c0_10 = arith.constant 0 : index
    %c0_11 = arith.constant 0 : index
    %c0_12 = arith.constant 0 : index
    %13 = vector.load %arg4[%c0_10, %c0_11, %c0_12] : memref<1x16x32xf32, #tpu.memory_space<vmem>>, vector<1x16x32xf32>
    %14 = vector.shape_cast %13 : vector<1x16x32xf32> to vector<16x32xf32>
    %15 = vector.shape_cast %12 : vector<16x32xf32> to vector<1x16x32xf32>
    tpu.vector_store %arg4[%c0_10, %c0_11, %c0_12], %15 {strides = array<i32>} : memref<1x16x32xf32, #tpu.memory_space<vmem>>, vector<1x16x32xf32>,
    return
  }
  func.func @transform_0(%arg0: i32, %arg1: i32) -> (i32, i32, i32, i32) {
    %c0_i32 = arith.constant 0 : i32
    %c0_i32_0 = arith.constant 0 : i32
    %c0_i32_1 = arith.constant 0 : i32
    return %arg0, %c0_i32, %arg1, %c0_i32_0 : i32, i32, i32, i32
  }
  func.func @transform_1(%arg0: i32, %arg1: i32) -> (i32, i32, i32, i32) {
    %c2_i32 = arith.constant 2 : i32
    %c0_i32 = arith.constant 0 : i32
    %c0_i32_0 = arith.constant 0 : i32
    return %arg0, %c2_i32, %arg1, %c0_i32 : i32, i32, i32, i32
  }
  func.func @transform_2(%arg0: i32, %arg1: i32) -> (i32, i32, i32) {
    %c0_i32 = arith.constant 0 : i32
    %c0_i32_0 = arith.constant 0 : i32
    return %arg0, %arg1, %c0_i32 : i32, i32, i32
  }
}

</mosaic_0001>

<bundles_post_ra>
// kernel: tpu_custom_call.1
= control target key start
LH: loop header
LB: loop body
LE: loop exit
PB: predicated region body
PF: predicated region fallthrough
CT: control target
= control target key end

     0   :  { %7 = vsyncpa [#allocation3], 0  ;;  %s886_s0 = inlined_call_operand.hbm [shape: f32[2,3,16,16], index: 0, kind: input, shape index: {}]   ;;  %s887_s1 = inlined_call_operand.hbm [shape: f32[2,3,16,16], index: 1, kind: input, shape index: {}]   ;;  %s888_s2 = inlined_call_operand.hbm [shape: f32[2,16,32], index: 2, kind: output, shape index: {}]  }
   0x1   :  { %9 = vsyncpa [#allocation3 + $0x1], 0 }
   0x2   :  { %10 = vsyncpa [#allocation6], 0 }
   0x3   :  { %12 = vsyncpa [#allocation6 + $0x1], 0 }
   0x4   :  { %13 = vsyncpa [#allocation4], 0 }
   0x5   :  { %15 = vsyncpa [#allocation4 + $0x1], 0  ;;  %s651_s9 = smov 0   ;;  %s653_s10 = smov 0  }
   0x6   :  { %s655_s11 = smov 0   ;;  %s657_s12 = smov 0  }
   0x7   :  { %s659_s13 = smov 0   ;;  %s661_s14 = smov 0  }
   0x8 LB: > { %s384_s15 = sadd.s32 4294967295, %s626_s14   ;;  %s385_s16 = sadd.s32 4294967294, %s626_s14   ;;  %s626_s14 = sphi %s661_s14, %s21_s14   ;;  %s622_s13 = sphi %s659_s13, %s906_s13   ;;  %s618_s12 = sphi %s657_s12, %s905_s12   ;;  %s614_s11 = sphi %s655_s11, %s904_s11   ;;  %s610_s10 = sphi %s653_s10, %s903_s10   ;;  %s606_s9 = sphi %s651_s9, %s902_s9  }
   0x9   : > { %s33_s17 = sadd.s32 1, %s622_s13  ;;  %s42_s18 = sadd.s32 1, %s614_s11 }
   0xa   : > { %p35_p0 = scmp.ge.s32.totalorder %s33_s17, 2  ;;  %p49_p1 = scmp.ne.s32.totalorder %s614_s11, %s610_s10 }
   0xb   : > { %p50_p2 = scmp.eq.s32.totalorder %s626_s14, 0  ;;  %p55_p3 = scmp.ne.s32.totalorder %s610_s10, %s606_s9 }
   0xc   : > { %s908_s17 = smov (%p35_p0, %s33_s17), 0  ;;  %p56_p5 = scmp.eq.s32.totalorder %s384_s15, 0 }
   0xd   : > { %p692_p4 = por %p50_p2, %p49_p1  ;;  %s37_s20 = ssub.s32 %s622_s13, %s908_s17 }
   0xe   : > { %p109_p6 = scmp.eq.s32.totalorder %s384_s15, 1  ;;  %p40_p7 = scmp.eq.s32.totalorder %s37_s20, 0 }
   0xf   : > { %p698_p8 = por %p56_p5, %p55_p3  ;;  %p115_p10 = scmp.eq.s32.totalorder %s385_s16, 1 }
  0x10   : > { %p702_p9 = por %p109_p6, %p49_p1  ;;  %p424_p13 = scmp.lt.s32.totalorder %s626_s14, 2 }
  0x11   : > { %s892_s21 = scalar_select %p698_p8, 1, 0 }
  0x12   : > { %s893_s22 = scalar_select %p702_p9, 1, 0 }
  0x13   : > { %s707_s23 = scalar_select %p40_p7, %s614_s11, %s42_s18  }
  0x14   : > { %p709_p11 = por %p115_p10, %p55_p3  ;;  %s716_s25 = sand.u32 1, %s614_s11  }
  0x15   : > { %s388_s26 = sshll.u32 %s716_s25, 4  ;;  %s406_s27 = smul.u32 768, %s622_s13 }
  0x16   : > { %s894_s24 = scalar_select %p709_p11, 1, 0 }
  0x17   : > { %s139_s28 = scalar_lea.vmem [#allocation2], %s388_s26  ;;  %p724_p0 = pnand %p424_p13, %p692_p4 }
  0x18   : > { %s148_s29 = sshll.u32 %s139_s28, 4  ;;  %s733_s5 = scalar_lea.hbm %s886_s0, %s406_s27  ;;  %s735_s29 = int_to_ptr.vmem [resolvable:$true] %s148_s29 }
  0x19   : > { %s136_s6 = scalar_lea.sflag [#allocation3], %s716_s25  ;;  %s479_s7 = scalar_lea.hbm %s733_s5, 256 }
  0x1a   : > { %p480_p2 = scmp.ne.s32.totalorder %s733_s5, %s479_s7  ;;  %p481_p3 = pneg %p724_p0 }
  0x1b   : > { %s484_s16 = scalar_lea.hbm %s886_s0, 1536  ;;  %p485_p6 = scmp.lt.u32.totalorder %s733_s5, %s886_s0 }
  0x1c   : > { %p482_p4 = pnand %p481_p3, %p480_p2  ;;  %p486_p7 = scmp.lt.u32.totalorder %s484_s16, %s479_s7 }
  0x1d   : > { %p488_p13 = scmp.lt.u32.totalorder %s479_s7, %s733_s5 }
  0x1e   : > { %p483_p5 = pneg %p482_p4  ;;  %p487_p10 = por %p486_p7, %p485_p6 }
  0x20   : > { %p489_p12 = por %p488_p13, %p487_p10 }
  0x22   : > { %p490_p1 = pnand %p489_p12, %p483_p5 }
  0x24   : > { %493 = shalt.err (!%p490_p1)
}
  0x25   : > { %s494_s20 = scalar_lea.vmem %s735_s29, 256  ;;  %s628_s28 = smov [#allocation2]  }
  0x26   : > { %p495_p2 = scmp.ne.s32.totalorder %s735_s29, %s494_s20  ;;  %s499_s3 = sshll.u32 %s628_s28, 4  ;;  %s500_s3 = int_to_ptr.vmem [resolvable:$false] %s499_s3 }
  0x27   : > { %s501_s4 = scalar_lea.vmem %s500_s3, 512  ;;  %p502_p9 = scmp.lt.s32.totalorder %s735_s29, %s500_s3 }
  0x28   : > { %p497_p4 = pnand %p495_p2, %p481_p3  ;;  %p503_p6 = scmp.lt.s32.totalorder %s501_s4, %s494_s20 }
  0x2a   : > { %p498_p11 = pneg %p497_p4  ;;  %p504_p7 = por %p503_p6, %p502_p9 }
  0x2c   : > { %p505_p10 = pnand %p504_p7, %p498_p11 }
  0x2e   : > { %508 = shalt.err (!%p505_p10)
}
  0x2f   : > { %s629_s7 = smov 128   ;;  %s630_s8 = smov 8  }
  0x30   : > { %416 = dma.hbm_to_vmem [thread:$0]  (!%p724_p0), %s733_s5, 256, %s735_s29, %s136_s6, %s629_s7, %s629_s7, %s630_s8  }
  0x31   : > { %p180_p9 = scmp.lt.s32.totalorder %s626_s14, 3  ;;  %s315_s18 = scalar_lea.hbm %s887_s1, %s406_s27 }
  0x32   : > { %p896_p11 = scmp.ge.s32.totalorder %s626_s14, 1  ;;  %s781_s20 = scalar_lea.hbm %s315_s18, 512 }
  0x33   : > { %s162_s28 = scalar_lea.vmem [#allocation5], %s388_s26  ;;  %s159_s29 = scalar_lea.sflag [#allocation6], %s716_s25 }
  0x34   : > { %p777_p12 = pnand %p896_p11, %p180_p9  ;;  %s172_s3 = sshll.u32 %s162_s28, 4  ;;  %s785_s3 = int_to_ptr.vmem [resolvable:$true] %s172_s3 }
  0x35   : > { %s539_s5 = scalar_lea.hbm %s315_s18, 768  ;;  %s514_s4 = scalar_lea.hbm %s887_s1, 1536 }
  0x36   : > { %p510_p1 = scmp.ne.s32.totalorder %s781_s20, %s539_s5  ;;  %p515_p2 = scmp.lt.u32.totalorder %s781_s20, %s887_s1 }
  0x37   : > { %p516_p4 = scmp.lt.u32.totalorder %s514_s4, %s539_s5  ;;  %p518_p7 = scmp.lt.u32.totalorder %s539_s5, %s781_s20 }
  0x38   : > { %p512_p5 = pnand %p510_p1, %p481_p3 }
  0x39   : > { %p517_p6 = por %p516_p4, %p515_p2 }
  0x3a   : > { %p513_p13 = pneg %p512_p5 }
  0x3b   : > { %p519_p10 = por %p518_p7, %p517_p6 }
  0x3d   : > { %p520_p9 = pnand %p519_p10, %p513_p13 }
  0x3f   : > { %523 = shalt.err (!%p520_p9)
}
  0x40   : > { %s524_s26 = scalar_lea.vmem %s785_s3, 256  ;;  %s631_s18 = smov [#allocation5]  }
  0x41   : > { %p525_p11 = scmp.ne.s32.totalorder %s785_s3, %s524_s26  ;;  %s529_s28 = sshll.u32 %s631_s18, 4  ;;  %s530_s28 = int_to_ptr.vmem [resolvable:$false] %s529_s28 }
  0x42   : > { %s531_s27 = scalar_lea.vmem %s530_s28, 512  ;;  %p532_p8 = scmp.lt.s32.totalorder %s785_s3, %s530_s28 }
  0x43   : > { %p527_p1 = pnand %p525_p11, %p481_p3  ;;  %p533_p2 = scmp.lt.s32.totalorder %s531_s27, %s524_s26 }
  0x45   : > { %p528_p5 = pneg %p527_p1  ;;  %p534_p4 = por %p533_p2, %p532_p8 }
  0x47   : > { %p535_p6 = pnand %p534_p4, %p528_p5 }
  0x49   : > { %538 = shalt.err (!%p535_p6)
}
  0x4a   : > { %419 = dma.hbm_to_vmem [thread:$0]  (!%p724_p0), %s781_s20, 256, %s785_s3, %s159_s29, %s629_s7, %s629_s7, %s630_s8  }
  0x4b   : > { %184 = sbr.rel (%p777_p12) target bundleno = 225 (0xe1), region = 28  ;;  %s818_s5 = sand.u32 (!%p777_p12), 1, %s610_s10  }
  0x4c   : > { %s393_s6 = sshll.u32 (!%p777_p12), %s818_s5, 4  ;;  %s187_s4 = scalar_lea.sflag (!%p777_p12), [#allocation3], %s818_s5 }
  0x4d   : > { %s190_s30 = scalar_lea.vmem (!%p777_p12), [#allocation2], %s393_s6  ;;  %p898_p8 = scmp.ne.s32.totalorder (!%p777_p12), %s892_s21, 0 }
  0x52   : > { %593 = dma.done.wait (%p898_p8), %s187_s4, 256  }
  0x53   : > { %595 = vsyncadd (%p898_p8), %s187_s4, 4294967040  ;;  %s196_s25 = scalar_lea.sflag [#allocation6], %s818_s5  ;;  %s199_s7 = scalar_lea.vmem [#allocation5], %s393_s6 }
  0x54   : > { %597 = dma.done.wait (%p898_p8), %s196_s25, 256  }
  0x55   : > { %599 = vsyncadd (%p898_p8), %s196_s25, 4294967040  ;;  %v234_v0 = vld [vmem:[%s199_s7] sm:$0xff]  ;;  %v235_v1 = vld [vmem:[%s199_s7 + $0x8] sm:$0xff]  ;;  %s632_s8 = smov 16   ;;  %vm248_vm0 = vcmask 130048   ;;  %vm251_vm1 = vcmask 261120  }
  0x56   : > { %v236_v2 = vmul.f32 0.13333334, %v234_v0  ;;  %v237_v3 = vmul.f32 0.13333334, %v235_v1  ;;  %v228_v6 = vld [vmem:[%s190_s30] sm:$0xff]  ;;  %v229_v8 = vld [vmem:[%s190_s30 + $0x8] sm:$0xff] }
  0x57   : > { %v230_v7 = vmul.f32 0.13333334, %v228_v6  ;;  %v231_v10 = vmul.f32 0.13333334, %v229_v8  ;;  %s224_s21 = scalar_lea.vmem [#allocation7], %s393_s6  ;;  %s405_s20 = sshll.u32 %s618_s12, 8 }
  0x58   : > { %v398_v4 = vadd.f32 -1.0, %v236_v2  ;;  %v399_v5 = vadd.f32 -1.0, %v237_v3  ;;  %s270_s19 = sshll.u32 %s224_s21, 4  ;;  %s837_s15 = scalar_lea.hbm %s888_s2, %s405_s20  ;;  %s832_s19 = int_to_ptr.vmem [resolvable:$true] %s270_s19 }
  0x59   : > { %v396_v9 = vadd.f32 -1.0, %v230_v7  ;;  %v397_v13 = vadd.f32 -1.0, %v231_v10  ;;  %s255_s16 = scalar_lea.sflag [#allocation4], %s818_s5  ;;  %s540_s26 = scalar_lea.vmem %s832_s19, 256 }
  0x5a   : > { %242 = vrot.lane.b32.xlu0 %v398_v4, %s632_s8  ;;  %p541_p0 = scmp.ne.s32.totalorder %s832_s19, %s540_s26  ;;  %p899_p3 = scmp.ne.s32.totalorder %s893_s22, 0 }
  0x5b   : > { %s633_s12 = smov [#allocation7]  }
  0x5c   : > { %p542_p12 = pnand %p541_p0, %p899_p3  ;;  %s544_s18 = sshll.u32 %s633_s12, 4  ;;  %s545_s18 = int_to_ptr.vmem [resolvable:$false] %s544_s18 }
  0x5d   : > { %s546_s28 = scalar_lea.vmem %s545_s18, 512  ;;  %p547_p7 = scmp.lt.s32.totalorder %s832_s19, %s545_s18 }
  0x5e   : > { %244 = vrot.lane.b32.xlu0 %v399_v5, %s632_s8  ;;  %p543_p13 = pneg %p542_p12  ;;  %p548_p10 = scmp.lt.s32.totalorder %s546_s28, %s540_s26 }
  0x60   : > { %p549_p9 = por %p548_p10, %p547_p7 }
  0x62   : > { %p550_p11 = pnand %p549_p9, %p543_p13 }
  0xcc   : > { %v243_v11 = vpop.permute.xlu0 %242 }
  0xcd   : > { %v249_v12 = vsel %vm248_vm0, %v396_v9, %v243_v11 }
  0xce   : > { %252 = vst.msk [vmem:[%s224_s21] sm:$0xff] %vm251_vm1, %v249_v12 }
  0xd0   : > { %v245_v14 = vpop.permute.xlu0 %244 }
  0xd1   : > { %v250_v15 = vsel %vm248_vm0, %v397_v13, %v245_v14 }
  0xd2   : > { %253 = vst.msk [vmem:[%s224_s21 + $0x8] sm:$0xff] %vm251_vm1, %v250_v15 }
  0xd3   : > { %553 = shalt.err (!%p550_p11)
}
  0xd4   : > { %s554_s27 = scalar_lea.hbm %s837_s15, 256  ;;  %s558_s30 = scalar_lea.hbm %s888_s2, 512 }
  0xd5   : > { %p555_p1 = scmp.ne.s32.totalorder %s837_s15, %s554_s27  ;;  %p559_p4 = scmp.lt.u32.totalorder %s837_s15, %s888_s2 }
  0xd6   : > { %p560_p6 = scmp.lt.u32.totalorder %s558_s30, %s554_s27  ;;  %p562_p0 = scmp.lt.u32.totalorder %s554_s27, %s837_s15 }
  0xd7   : > { %p556_p5 = pnand %p555_p1, %p899_p3 }
  0xd8   : > { %p561_p8 = por %p560_p6, %p559_p4 }
  0xd9   : > { %p557_p2 = pneg %p556_p5 }
  0xda   : > { %p563_p12 = por %p562_p0, %p561_p8 }
  0xdc   : > { %p564_p13 = pnand %p563_p12, %p557_p2 }
  0xde   : > { %567 = shalt.err (!%p564_p13)
}
  0xdf   : > { %s634_s8 = smov 128   ;;  %s635_s21 = smov 8  }
  0xe0   : > { %411 = dma.vmem_to_hbm [thread:$0]  (%p899_p3), %s832_s19, 256, %s837_s15, %s255_s16, %s634_s8, %s634_s8, %s635_s21  }
  0xe1 PF: > { %s285_s20 = sand.u32 1, %s606_s9   ;;  %p900_p7 = scmp.ne.s32.totalorder %s894_s24, 0 }
  0xe2   : > { %p901_p10 = scmp.ge.s32.totalorder %s626_s14, 2  ;;  %s286_s3 = scalar_lea.sflag [#allocation4], %s285_s20 }
  0xe4   : > { %p421_p9 = pnand %p901_p10, %p900_p7 }
  0xe6   : > { %601 = dma.done.wait (!%p421_p9), %s286_s3, 256  }
  0xe7   : > { %603 = vsyncadd (!%p421_p9), %s286_s3, 4294967040  ;;  %s21_s14 = sadd.s32 1, %s626_s14   ;;  %s902_s9 = smov %s610_s10 }
  0xe8   : > { %p18_p11 = scmp.ge.s32.totalorder %s21_s14, 4   ;;  %s903_s10 = smov %s614_s11 }
  0xe9   : > { %s904_s11 = smov %s707_s23  ;;  %s905_s12 = smov %s622_s13 }
  0xea   : > { %s906_s13 = smov %s908_s17  ;;  %20 = sbr.rel (!%p18_p11) target bundleno = 8 (0x8), region = 86 }
  0xf1   :  { %291 = vsyncpa [#allocation3], 1 }
  0xf2   :  { %293 = vsyncpa [#allocation3 + $0x1], 1 }
  0xf3   :  { %294 = vsyncpa [#allocation6], 1 }
  0xf4   :  { %296 = vsyncpa [#allocation6 + $0x1], 1 }
  0xf5   :  { %297 = vsyncpa [#allocation4], 1 }
  0xf6   :  { %299 = vsyncpa [#allocation4 + $0x1], 1 }

</bundles_post_ra>
